<compile_context>
chip_gen: v6e
topology: v6e:2x2x1
jax: 0.10.0
libtpu: 0.0.40
codegen_flags: <defaults>
</compile_context>

<pallas_src>
import functools

import numpy as np
import jax
import jax.numpy as jnp
from jax.experimental import pallas as pl
from jax.experimental.pallas import tpu as pltpu


# ----------------------------------------------------------------------------
# Config mirroring the `opt` object used by LocLoss (deterministic, in-script).
# The module has no learnable parameters, so there are no weights to init.
# ----------------------------------------------------------------------------
CENTER_R = 3          # opt.pos_label  (odd side length of the positive square)
POS_NUM = 8           # opt.pos_num    (top-k positives taken from the cls map)
LOC_LABEL = "400"     # opt.loc_label  ('400' -> bias scaled by (H-1, W-1))
LOC_LOSS = "MSE"      # opt.loc_loss   (only the 'MSE' branch is implemented)


def _loc_loss_kernel(scal_ref, planes_ref, loc_ref, out_ref, *,
                     bt, pos_num, ns, use_400, inv_h1, inv_w1):
    """One batch tile -> partial sum of squared errors over positives.

    scal_ref   : SMEM (B*(pos_num+2),) f32; per batch: [Ax, Ay, cand_0..cand_P-1]
                 cand = flat index of a top-k hit inside the label window,
                 padded with -1 (never matches) otherwise.
    planes_ref : VMEM (3, HW/128, 128) f32 resident planes: [row, col, flat].
    loc_ref    : VMEM (BT, 2, HW/128, 128) loc maps (ch 0 = x, ch 1 = y).
    out_ref    : VMEM (8, 128) f32; whole block = this step's sum of sq errors.
    """
    step = pl.program_id(0)
    row_f = planes_ref[0]
    col_f = planes_ref[1]
    flat_f = planes_ref[2]

    total = jnp.zeros((), jnp.float32)
    for j in range(bt):                       # static unroll over the batch tile
        base = (step * bt + j) * ns
        ax = scal_ref[base + 0]
        ay = scal_ref[base + 1]

        # Positive mask: membership in the precomputed window ∩ top-k candidate
        # set (at most pos_num equality compares; -1 padding never matches).
        pos = flat_f == scal_ref[base + 2]
        for t in range(1, pos_num):
            pos = pos | (flat_f == scal_ref[base + 2 + t])

        locx = loc_ref[j, 0].astype(jnp.float32)
        locy = loc_ref[j, 1].astype(jnp.float32)
        if use_400:    # bias folded: (rx - row/(H-1))*(H-1) = rx*(H-1) - row
            dx = locx - (ax - row_f)
            dy = locy - (ay - col_f)
        else:
            dx = locx - (ax - row_f * inv_h1)
            dy = locy - (ay - col_f * inv_w1)

        total = total + jnp.sum(jnp.where(pos, dx * dx + dy * dy, 0.0))

    out_ref[...] = jnp.broadcast_to(total, (8, 128))


def loc_loss(cls_input, loc_input, center_rate,
             center_R=CENTER_R, pos_num=POS_NUM, loc_label=LOC_LABEL):
    """cls_input: (B,1,H,W), loc_input: (B,2,H,W) (NCHW),
    center_rate = (ratex, ratey), each of shape (B,)."""
    ratex, ratey = center_rate
    b, c, h, w = cls_input.shape
    assert c == 1 and h == w, "LocLoss flattening semantics assume c==1, H==W"
    assert (h * w) % 128 == 0, "lane-dense layout requires H*W % 128 == 0"
    assert h * w < (1 << 24), "flat index must be exactly representable in f32"
    assert center_R % 2 == 1, "create_labels window assumes odd opt.pos_label"
    nt = (h * w) // 128
    use_400 = (loc_label == "400")
    half = float(center_R // 2)

    # --- plain-JAX glue -------------------------------------------------------
    # TODO(synk): per-batch top-k stays in plain JAX (no Pallas TPU top-k
    # primitive); jax.lax.top_k tie-breaking is not bit-matched to torch.topk.
    cls_flat = cls_input.reshape(b, h * w)
    _, topk_idx = jax.lax.top_k(cls_flat, pos_num)             # (B, P) int32

    rx = ratex.astype(jnp.float32)
    ry = ratey.astype(jnp.float32)
    cx = jnp.round(rx * (h - 1))[:, None]                      # rounded centre row
    cy = jnp.round(ry * (w - 1))[:, None]                      # rounded centre col

    # window ∩ top-k as <= pos_num flat candidate indices per batch (-1 padded);
    # O(B*pos_num) work, removes the per-element window math from the kernel.
    t_row = (topk_idx // w).astype(jnp.float32)
    t_col = (topk_idx % w).astype(jnp.float32)
    in_win = (jnp.abs(t_row - cx) <= half) & (jnp.abs(t_col - cy) <= half)
    cand = jnp.where(in_win, topk_idx, -1).astype(jnp.float32)   # (B, P)
    cnt = jnp.sum(in_win).astype(jnp.float32)                    # total positives

    ax = rx * (h - 1.0) if use_400 else rx
    ay = ry * (w - 1.0) if use_400 else ry
    # Flattened 1-D scalar-prefetch array (avoids 2-D SMEM padding).
    scal = jnp.concatenate([ax[:, None], ay[:, None], cand], axis=1).reshape(-1)

    # Batch-invariant planes (row, col, flat), resident in VMEM across steps.
    flat = jnp.arange(h * w, dtype=jnp.int32)
    planes = jnp.stack([(flat // w).astype(jnp.float32),
                        (flat % w).astype(jnp.float32),
                        flat.astype(jnp.float32)], axis=0).reshape(3, nt, 128)

    # One contiguous, lane-dense view of loc_input; source dtype kept through DMA.
    loc_packed = loc_input.reshape(b, 2, nt, 128)

    # --- batch-tile sizing ----------------------------------------------------
    itemsize = jnp.dtype(loc_input.dtype).itemsize
    bytes_per_batch = 2 * h * w * itemsize
    planes_bytes = 3 * h * w * 4
    loc_budget = 12 * (1 << 20)              # double-buffered loc blocks, v5e-safe
    bt_cap = max(1, loc_budget // (2 * bytes_per_batch))
    bt_cap = min(bt_cap, 64)                 # keep the static unroll bounded
    if b >= 2:
        bt_cap = min(bt_cap, (b + 1) // 2)   # >=2 grid steps for v7x megacore
    bt = max(d for d in range(1, b + 1) if b % d == 0 and d <= bt_cap)
    steps = b // bt

    vmem_needed = 2 * bt * bytes_per_batch + 2 * planes_bytes + 2 * 8 * 128 * 4
    vmem_limit = int(min(max(vmem_needed + (4 << 20), 16 << 20), 64 << 20))

    kernel = functools.partial(
        _loc_loss_kernel, bt=bt, pos_num=pos_num, ns=pos_num + 2,
        use_400=use_400, inv_h1=1.0 / (h - 1.0), inv_w1=1.0 / (w - 1.0))

    grid_spec = pltpu.PrefetchScalarGridSpec(
        num_scalar_prefetch=1,                                  # scal (SMEM)
        grid=(steps,),
        in_specs=[pl.BlockSpec((3, nt, 128), lambda i, scal_r: (0, 0, 0)),
                  pl.BlockSpec((bt, 2, nt, 128), lambda i, scal_r: (i, 0, 0, 0))],
        out_specs=pl.BlockSpec((None, 8, 128), lambda i, scal_r: (i, 0, 0)),
    )

    partials = pl.pallas_call(
        kernel,
        grid_spec=grid_spec,
        out_shape=jax.ShapeDtypeStruct((steps, 8, 128), jnp.float32),
        compiler_params=pltpu.CompilerParams(
            dimension_semantics=("parallel",),
            vmem_limit_bytes=vmem_limit),
    )(scal, planes, loc_packed)

    # Final combine in the wrapper: one global mean over all positives.
    sum_sq = jnp.sum(partials[:, 0, 0])
    return jnp.where(cnt > 0.0, sum_sq / jnp.maximum(cnt, 1.0), 0.0)


# ----------------------------------------------------------------------------
# Pure-numpy reference (mirrors the PyTorch forward, 'MSE' branch).
# ----------------------------------------------------------------------------
def _reference_numpy(cls_np, loc_np, ratex, ratey, center_R, pos_num, use_400):
    b, _, h, w = cls_np.shape
    half = center_R // 2
    sq_sum, cnt = 0.0, 0
    for i in range(b):
        cx = np.round(ratex[i] * (h - 1))
        cy = np.round(ratey[i] * (w - 1))
        rows = np.arange(h, dtype=np.float64)[:, None]
        cols = np.arange(w, dtype=np.float64)[None, :]
        label = (np.abs(rows - cx) <= half) & (np.abs(cols - cy) <= half)
        flat = cls_np[i, 0].reshape(-1)
        topk_idx = np.argsort(-flat, kind="stable")[:pos_num]
        tmask = np.zeros(h * w, bool)
        tmask[topk_idx] = True
        pos = label.reshape(-1) & tmask
        sx = (h - 1) if use_400 else 1.0
        sy = (w - 1) if use_400 else 1.0
        bx = np.broadcast_to((ratex[i] - rows / (h - 1)) * sx, (h, w)).reshape(-1)
        by = np.broadcast_to((ratey[i] - cols / (w - 1)) * sy, (h, w)).reshape(-1)
        px = loc_np[i, 0].reshape(-1)
        py = loc_np[i, 1].reshape(-1)
        sq_sum += np.sum((px[pos] - bx[pos]) ** 2) + np.sum((py[pos] - by[pos]) ** 2)
        cnt += int(pos.sum())
    return 0.0 if cnt == 0 else sq_sum / cnt


if __name__ == "__main__":
    key = jax.random.PRNGKey(0)
    k1, k2, k3, k4 = jax.random.split(key, 4)

    B, H, W = 2, 16, 16
    cls_input = jax.random.normal(k1, (B, 1, H, W), jnp.float32)
    loc_input = jax.random.normal(k2, (B, 2, H, W), jnp.float32)
    ratex = jax.random.uniform(k3, (B,), jnp.float32)
    ratey = jax.random.uniform(k4, (B,), jnp.float32)

    # Bump the cls score at batch 0's centre so the global positive set is
    # non-empty (deterministic). Batch 1 keeps a random top-k, exercising the
    # "-1 padded candidate" path as well; both implementations handle it.
    cxs = np.round(np.asarray(ratex) * (H - 1)).astype(int)
    cys = np.round(np.asarray(ratey) * (W - 1)).astype(int)
    cls_input = cls_input.at[0, 0, cxs[0], cys[0]].add(10.0)

    loss = loc_loss(cls_input, loc_input, (ratex, ratey))
    loss = jax.block_until_ready(loss)

    ref = _reference_numpy(np.asarray(cls_input), np.asarray(loc_input),
                           np.asarray(ratex), np.asarray(ratey),
                           CENTER_R, POS_NUM, LOC_LABEL == "400")
    assert np.allclose(np.asarray(loss), ref, rtol=1e-4, atol=1e-5), (float(loss), ref)
    print("KERNEL_OK")
</pallas_src>

<mosaic_0001>
module attributes {stable_mosaic.version = 11 : i64} {
  func.func @_loc_loss_kernel(%arg0: i32, %arg1: memref<20xf32, #tpu.memory_space<smem>>, %arg2: memref<3x2x128xf32, #tpu.memory_space<vmem>>, %arg3: memref<1x2x2x128xf32, #tpu.memory_space<vmem>>, %arg4: memref<1x8x128xf32, #tpu.memory_space<vmem>>) attributes {dimension_semantics = [#tpu.dimension_semantics<parallel>], iteration_bounds = array<i64: 2>, scalar_prefetch = 1 : i64, scratch_operands = 0 : i64, tpu.core_type = #tpu.core_type<tc>, window_params = [{pipeline_mode = #tpu.pipeline_mode<synchronous>, transform_indices = @transform_0, window_bounds = array<i64: 3, 2, 128>}, {transform_indices = @transform_1, window_bounds = array<i64: 1, 2, 2, 128>}, {transform_indices = @transform_2, window_bounds = array<i64: 1, 8, 128>}]} {
    %c0 = arith.constant 0 : index
    %c0_0 = arith.constant 0 : index
    %c0_1 = arith.constant 0 : index
    %0 = vector.load %arg2[%c0, %c0_0, %c0_1] : memref<3x2x128xf32, #tpu.memory_space<vmem>>, vector<1x2x128xf32>
    %1 = vector.shape_cast %0 : vector<1x2x128xf32> to vector<2x128xf32>
    %c1 = arith.constant 1 : index
    %c0_2 = arith.constant 0 : index
    %c0_3 = arith.constant 0 : index
    %2 = vector.load %arg2[%c1, %c0_2, %c0_3] : memref<3x2x128xf32, #tpu.memory_space<vmem>>, vector<1x2x128xf32>
    %3 = vector.shape_cast %2 : vector<1x2x128xf32> to vector<2x128xf32>
    %c2 = arith.constant 2 : index
    %c0_4 = arith.constant 0 : index
    %c0_5 = arith.constant 0 : index
    %4 = vector.load %arg2[%c2, %c0_4, %c0_5] : memref<3x2x128xf32, #tpu.memory_space<vmem>>, vector<1x2x128xf32>
    %5 = vector.shape_cast %4 : vector<1x2x128xf32> to vector<2x128xf32>
    %c1_i32 = arith.constant 1 : i32
    %6 = arith.muli %arg0, %c1_i32 : i32
    %c0_i32 = arith.constant 0 : i32
    %7 = arith.addi %6, %c0_i32 : i32
    %c10_i32 = arith.constant 10 : i32
    %8 = arith.muli %7, %c10_i32 : i32
    %c0_i32_6 = arith.constant 0 : i32
    %9 = arith.addi %8, %c0_i32_6 : i32
    %10 = arith.index_cast %9 : i32 to index
    %11 = memref.load %arg1[%10] : memref<20xf32, #tpu.memory_space<smem>>
    %c1_i32_7 = arith.constant 1 : i32
    %12 = arith.addi %8, %c1_i32_7 : i32
    %13 = arith.index_cast %12 : i32 to index
    %14 = memref.load %arg1[%13] : memref<20xf32, #tpu.memory_space<smem>>
    %c2_i32 = arith.constant 2 : i32
    %15 = arith.addi %8, %c2_i32 : i32
    %16 = arith.index_cast %15 : i32 to index
    %17 = memref.load %arg1[%16] : memref<20xf32, #tpu.memory_space<smem>>
    %18 = vector.broadcast %17 : f32 to vector<2x128xf32>
    %19 = arith.cmpf oeq, %5, %18 : vector<2x128xf32>
    %c2_i32_8 = arith.constant 2 : i32
    %20 = arith.addi %8, %c2_i32_8 : i32
    %c1_i32_9 = arith.constant 1 : i32
    %21 = arith.addi %20, %c1_i32_9 : i32
    %22 = arith.index_cast %21 : i32 to index
    %23 = memref.load %arg1[%22] : memref<20xf32, #tpu.memory_space<smem>>
    %24 = vector.broadcast %23 : f32 to vector<2x128xf32>
    %25 = arith.cmpf oeq, %5, %24 : vector<2x128xf32>
    %26 = arith.ori %19, %25 : vector<2x128xi1>
    %c2_i32_10 = arith.constant 2 : i32
    %27 = arith.addi %8, %c2_i32_10 : i32
    %c2_i32_11 = arith.constant 2 : i32
    %28 = arith.addi %27, %c2_i32_11 : i32
    %29 = arith.index_cast %28 : i32 to index
    %30 = memref.load %arg1[%29] : memref<20xf32, #tpu.memory_space<smem>>
    %31 = vector.broadcast %30 : f32 to vector<2x128xf32>
    %32 = arith.cmpf oeq, %5, %31 : vector<2x128xf32>
    %33 = arith.ori %26, %32 : vector<2x128xi1>
    %c2_i32_12 = arith.constant 2 : i32
    %34 = arith.addi %8, %c2_i32_12 : i32
    %c3_i32 = arith.constant 3 : i32
    %35 = arith.addi %34, %c3_i32 : i32
    %36 = arith.index_cast %35 : i32 to index
    %37 = memref.load %arg1[%36] : memref<20xf32, #tpu.memory_space<smem>>
    %38 = vector.broadcast %37 : f32 to vector<2x128xf32>
    %39 = arith.cmpf oeq, %5, %38 : vector<2x128xf32>
    %40 = arith.ori %33, %39 : vector<2x128xi1>
    %c2_i32_13 = arith.constant 2 : i32
    %41 = arith.addi %8, %c2_i32_13 : i32
    %c4_i32 = arith.constant 4 : i32
    %42 = arith.addi %41, %c4_i32 : i32
    %43 = arith.index_cast %42 : i32 to index
    %44 = memref.load %arg1[%43] : memref<20xf32, #tpu.memory_space<smem>>
    %45 = vector.broadcast %44 : f32 to vector<2x128xf32>
    %46 = arith.cmpf oeq, %5, %45 : vector<2x128xf32>
    %47 = arith.ori %40, %46 : vector<2x128xi1>
    %c2_i32_14 = arith.constant 2 : i32
    %48 = arith.addi %8, %c2_i32_14 : i32
    %c5_i32 = arith.constant 5 : i32
    %49 = arith.addi %48, %c5_i32 : i32
    %50 = arith.index_cast %49 : i32 to index
    %51 = memref.load %arg1[%50] : memref<20xf32, #tpu.memory_space<smem>>
    %52 = vector.broadcast %51 : f32 to vector<2x128xf32>
    %53 = arith.cmpf oeq, %5, %52 : vector<2x128xf32>
    %54 = arith.ori %47, %53 : vector<2x128xi1>
    %c2_i32_15 = arith.constant 2 : i32
    %55 = arith.addi %8, %c2_i32_15 : i32
    %c6_i32 = arith.constant 6 : i32
    %56 = arith.addi %55, %c6_i32 : i32
    %57 = arith.index_cast %56 : i32 to index
    %58 = memref.load %arg1[%57] : memref<20xf32, #tpu.memory_space<smem>>
    %59 = vector.broadcast %58 : f32 to vector<2x128xf32>
    %60 = arith.cmpf oeq, %5, %59 : vector<2x128xf32>
    %61 = arith.ori %54, %60 : vector<2x128xi1>
    %c2_i32_16 = arith.constant 2 : i32
    %62 = arith.addi %8, %c2_i32_16 : i32
    %c7_i32 = arith.constant 7 : i32
    %63 = arith.addi %62, %c7_i32 : i32
    %64 = arith.index_cast %63 : i32 to index
    %65 = memref.load %arg1[%64] : memref<20xf32, #tpu.memory_space<smem>>
    %66 = vector.broadcast %65 : f32 to vector<2x128xf32>
    %67 = arith.cmpf oeq, %5, %66 : vector<2x128xf32>
    %68 = arith.ori %61, %67 : vector<2x128xi1>
    %c0_17 = arith.constant 0 : index
    %c0_18 = arith.constant 0 : index
    %c0_19 = arith.constant 0 : index
    %c0_20 = arith.constant 0 : index
    %69 = vector.load %arg3[%c0_17, %c0_18, %c0_19, %c0_20] : memref<1x2x2x128xf32, #tpu.memory_space<vmem>>, vector<1x1x2x128xf32>
    %70 = vector.shape_cast %69 : vector<1x1x2x128xf32> to vector<2x128xf32>
    %c0_21 = arith.constant 0 : index
    %c1_22 = arith.constant 1 : index
    %c0_23 = arith.constant 0 : index
    %c0_24 = arith.constant 0 : index
    %71 = vector.load %arg3[%c0_21, %c1_22, %c0_23, %c0_24] : memref<1x2x2x128xf32, #tpu.memory_space<vmem>>, vector<1x1x2x128xf32>
    %72 = vector.shape_cast %71 : vector<1x1x2x128xf32> to vector<2x128xf32>
    %73 = vector.broadcast %11 : f32 to vector<2x128xf32>
    %74 = arith.subf %73, %1 : vector<2x128xf32>
    %75 = arith.subf %70, %74 : vector<2x128xf32>
    %76 = vector.broadcast %14 : f32 to vector<2x128xf32>
    %77 = arith.subf %76, %3 : vector<2x128xf32>
    %78 = arith.subf %72, %77 : vector<2x128xf32>
    %79 = arith.mulf %75, %75 : vector<2x128xf32>
    %80 = arith.mulf %78, %78 : vector<2x128xf32>
    %81 = arith.addf %79, %80 : vector<2x128xf32>
    %cst = arith.constant 0.000000e+00 : f32
    %82 = vector.broadcast %cst : f32 to vector<2x128xf32>
    %83 = arith.select %68, %81, %82 : vector<2x128xi1>, vector<2x128xf32>
    %84 = vector.shape_cast %83 : vector<2x128xf32> to vector<1x2x128xf32>
    %cst_25 = arith.constant dense<0.000000e+00> : vector<1xf32>
    %85 = vector.multi_reduction <add>, %84, %cst_25 [1, 2] : vector<1x2x128xf32> to vector<1xf32>
    %86 = vector.shape_cast %85 : vector<1xf32> to vector<1x1x1xf32>
    %87 = vector.extract %86[0, 0, 0] : f32 from vector<1x1x1xf32>
    %cst_26 = arith.constant 0.000000e+00 : f32
    %88 = arith.addf %cst_26, %87 : f32
    %89 = vector.broadcast %88 : f32 to vector<8x128xf32>
    %c0_27 = arith.constant 0 : index
    %c0_28 = arith.constant 0 : index
    %c0_29 = arith.constant 0 : index
    %90 = vector.load %arg4[%c0_27, %c0_28, %c0_29] : memref<1x8x128xf32, #tpu.memory_space<vmem>>, vector<1x8x128xf32>
    %91 = vector.shape_cast %90 : vector<1x8x128xf32> to vector<8x128xf32>
    %92 = vector.shape_cast %89 : vector<8x128xf32> to vector<1x8x128xf32>
    tpu.vector_store %arg4[%c0_27, %c0_28, %c0_29], %92 {strides = array<i32>} : memref<1x8x128xf32, #tpu.memory_space<vmem>>, vector<1x8x128xf32>,
    return
  }
  func.func @transform_0(%arg0: i32, %arg1: memref<20xf32, #tpu.memory_space<smem>>) -> (i32, i32, i32) {
    %c0_i32 = arith.constant 0 : i32
    %c0_i32_0 = arith.constant 0 : i32
    %c0_i32_1 = arith.constant 0 : i32
    %c0_i32_2 = arith.constant 0 : i32
    return %c0_i32, %c0_i32_0, %c0_i32_1 : i32, i32, i32
  }
  func.func @transform_1(%arg0: i32, %arg1: memref<20xf32, #tpu.memory_space<smem>>) -> (i32, i32, i32, i32) {
    %c0_i32 = arith.constant 0 : i32
    %c0_i32_0 = arith.constant 0 : i32
    %c0_i32_1 = arith.constant 0 : i32
    %c0_i32_2 = arith.constant 0 : i32
    return %arg0, %c0_i32, %c0_i32_0, %c0_i32_1 : i32, i32, i32, i32
  }
  func.func @transform_2(%arg0: i32, %arg1: memref<20xf32, #tpu.memory_space<smem>>) -> (i32, i32, i32) {
    %c0_i32 = arith.constant 0 : i32
    %c0_i32_0 = arith.constant 0 : i32
    %c0_i32_1 = arith.constant 0 : i32
    return %arg0, %c0_i32, %c0_i32_0 : i32, i32, i32
  }
}

</mosaic_0001>

<bundles_post_ra>
// kernel: tpu_custom_call.1
= control target key start
LH: loop header
LB: loop body
LE: loop exit
PB: predicated region body
PF: predicated region fallthrough
CT: control target
= control target key end

     0   :  { %s566_s12 = smov [#allocation3]   ;;  %s784_s0 = inlined_call_operand.hbm [shape: f32[20], index: 0, kind: input, shape index: {}]   ;;  %s785_s1 = inlined_call_operand.hbm [shape: f32[3,2,128], index: 1, kind: input, shape index: {}]   ;;  %s786_s2 = inlined_call_operand.hbm [shape: f32[2,2,2,128], index: 2, kind: input, shape index: {}]   ;;  %s787_s3 = inlined_call_operand.hbm [shape: f32[2,8,128], index: 3, kind: output, shape index: {}]  }
   0x1   :  { %9 = dma.hbm_to_smem %s784_s0, 16, %s566_s12, [#allocation2] }
   0x2   :  { %536 = dma.done.wait [#allocation2], 16 }
   0x3   :  { %537 = vsyncadd [#allocation2], 4294967280 }
   0x4   :  { %11 = sfence }
   0x5   :  { %12 = vsyncpa [#allocation5], 0 }
   0x6   :  { %13 = vsyncpa [#allocation8], 0 }
   0x7   :  { %15 = vsyncpa [#allocation8 + $0x1], 0 }
   0x8   :  { %16 = vsyncpa [#allocation6], 0 }
   0x9   :  { %18 = vsyncpa [#allocation6 + $0x1], 0  ;;  %s595_s15 = smov 0   ;;  %s597_s16 = smov 0  }
   0xa   :  { %s599_s17 = smov 0   ;;  %s601_s18 = smov 0  }
   0xb LB: > { %s616_s0 = sadd.s32 4294967295, %s564_s18   ;;  %s353_s19 = sadd.s32 4294967294, %s564_s18   ;;  %s564_s18 = sphi %s601_s18, %s809_s18   ;;  %s560_s17 = sphi %s599_s17, %s808_s17   ;;  %s556_s16 = sphi %s597_s16, %s807_s16   ;;  %s552_s15 = sphi %s595_s15, %s806_s15  }
   0xc   : > { %p65_p0 = scmp.ne.s32.totalorder %s556_s16, %s552_s15  ;;  %p788_p1 = scmp.eq.s32.totalorder %s616_s0, 0 }
   0xd   : > { %p95_p3 = scmp.eq.s32.totalorder %s353_s19, 1  ;;  %p354_p5 = scmp.ge.s32.totalorder %s564_s18, 1 }
   0xe   : > { %p625_p4 = por %p788_p1, %p65_p0  ;;  %p102_p7 = scmp.lt.s32.totalorder %s564_s18, 3 }
   0xf   : > { %p630_p6 = por %p95_p3, %p65_p0  ;;  %s567_s23 = smov [#allocation4]  }
  0x10   : > { %s792_s20 = scalar_select %p625_p4, 1, 0 }
  0x11   : > { %s793_s21 = scalar_select %p630_p6, 1, 0 }
  0x12   : > { %p635_p8 = pnand %p354_p5, %p102_p7  ;;  %s114_s24 = sshll.u32 %s567_s23, 4  ;;  %s115_s24 = int_to_ptr.vmem [resolvable:$true] %s114_s24 }
  0x13   : > { %s649_s26 = sadd.s32 1, %s564_s18   ;;  %s52_s27 = sadd.s32 1, %s560_s17 }
  0x14   : > { %s794_s22 = scalar_select %p635_p8, 1, 0 }
  0x15   : > { %p380_p9 = pneg %p635_p8  ;;  %s49_s28 = ssub.s32 %s564_s18, %s649_s26 }
  0x16   : > { %s451_s29 = scalar_lea.vmem %s115_s24, 96  ;;  %p459_p5 = scmp.lt.s32.totalorder %s115_s24, %s115_s24 }
  0x17   : > { %p644_p11 = pnand %p380_p9, %p788_p1  ;;  %p452_p13 = scmp.ne.s32.totalorder %s115_s24, %s451_s29 }
  0x18   : > { %p460_p7 = scmp.lt.s32.totalorder %s451_s29, %s451_s29 }
  0x19   : > { %p442_p12 = pneg %p644_p11 }
  0x1a   : > { %p461_p10 = por %p460_p7, %p459_p5 }
  0x1b   : > { %p454_p0 = pnand %p452_p13, %p442_p12 }
  0x1d   : > { %p455_p3 = pneg %p454_p0 }
  0x1f   : > { %p462_p2 = pnand %p461_p10, %p455_p3 }
  0x21   : > { %465 = shalt.err (!%p462_p2)
}
  0x22   : > { %s568_s30 = smov 32   ;;  %s569_s4 = smov 2  }
  0x23   : > { %383 = dma.hbm_to_vmem [thread:$0]  (!%p644_p11), %s785_s1, 96, %s115_s24, [#allocation5], %s568_s30, %s568_s30, %s569_s4  }
  0x24   : > { %p50_p2 = scmp.eq.s32.totalorder %s49_s28, 0  ;;  %p59_p9 = scmp.ne.s32.totalorder %s560_s17, %s556_s16 }
  0x25   : > { %p60_p10 = scmp.eq.s32.totalorder %s564_s18, 0  ;;  %p393_p12 = scmp.lt.s32.totalorder %s564_s18, 2 }
  0x26   : > { %s669_s7 = scalar_select %p50_p2, %s560_s17, %s52_s27  }
  0x27   : > { %p61_p13 = por %p60_p10, %p59_p9  ;;  %p796_p0 = scmp.eq.s32.totalorder %s616_s0, 1 }
  0x28   : > { %s128_s9 = sand.u32 1, %s560_s17   ;;  %s369_s10 = sshll.u32 %s564_s18, 6 }
  0x29   : > { %p673_p3 = por %p796_p0, %p59_p9  ;;  %s357_s11 = sshll.u32 %s128_s9, 2 }
  0x2a   : > { %s682_s14 = scalar_lea.hbm %s786_s2, %s369_s10  ;;  %s132_s19 = scalar_lea.vmem [#allocation7], %s357_s11 }
  0x2b   : > { %s797_s8 = scalar_select %p673_p3, 1, 0 }
  0x2c   : > { %s139_s23 = sshll.u32 %s132_s19, 4  ;;  %p684_p11 = pnand %p393_p12, %p61_p13  ;;  %s688_s23 = int_to_ptr.vmem [resolvable:$true] %s139_s23 }
  0x2d   : > { %s690_s25 = scalar_lea.sflag [#allocation8], %s128_s9  ;;  %s466_s27 = scalar_lea.hbm %s682_s14, 64 }
  0x2e   : > { %p467_p5 = scmp.ne.s32.totalorder %s682_s14, %s466_s27  ;;  %p468_p7 = pneg %p684_p11 }
  0x2f   : > { %s471_s5 = scalar_lea.hbm %s786_s2, 128  ;;  %p472_p10 = scmp.lt.s32.totalorder %s682_s14, %s786_s2 }
  0x30   : > { %p469_p2 = pnand %p468_p7, %p467_p5  ;;  %p473_p12 = scmp.lt.s32.totalorder %s471_s5, %s466_s27 }
  0x32   : > { %p470_p9 = pneg %p469_p2  ;;  %p474_p13 = por %p473_p12, %p472_p10 }
  0x34   : > { %p475_p0 = pnand %p474_p13, %p470_p9 }
  0x36   : > { %478 = shalt.err (!%p475_p0)
}
  0x37   : > { %s479_s9 = scalar_lea.vmem %s688_s23, 64  ;;  %s570_s11 = smov [#allocation7]  }
  0x38   : > { %p480_p1 = scmp.ne.s32.totalorder %s688_s23, %s479_s9  ;;  %s484_s12 = sshll.u32 %s570_s11, 4  ;;  %s485_s12 = int_to_ptr.vmem [resolvable:$false] %s484_s12 }
  0x39   : > { %s486_s13 = scalar_lea.vmem %s485_s12, 128  ;;  %p487_p2 = scmp.lt.s32.totalorder %s688_s23, %s485_s12 }
  0x3a   : > { %p482_p6 = pnand %p480_p1, %p468_p7  ;;  %p488_p3 = scmp.lt.s32.totalorder %s486_s13, %s479_s9 }
  0x3c   : > { %p483_p5 = pneg %p482_p6  ;;  %p489_p4 = por %p488_p3, %p487_p2 }
  0x3e   : > { %p490_p8 = pnand %p489_p4, %p483_p5 }
  0x40   : > { %493 = shalt.err (!%p490_p8)
}
  0x41   : > { %387 = dma.hbm_to_vmem [thread:$0]  (!%p684_p11), %s682_s14, 64, %s688_s23, %s690_s25, %s568_s30, %s568_s30, %s569_s4  }
  0x42   : > { %p799_p1 = scmp.ne.s32.totalorder %s794_s22, 0 }
  0x43   : > { %p800_p6 = scmp.eq.s32.totalorder (!%p799_p1), %s616_s0, 0 }
  0x44   : > { %151 = sbr.rel (%p799_p1) target bundleno = 314 (0x13a), region = 28 }
  0x49   : > { %539 = dma.done.wait (%p800_p6), [#allocation5], 96   ;;  %p801_p7 = pmov %p800_p6 }
  0x4a   : > { %s721_s19 = sand.u32 1, %s556_s16   ;;  %p802_p4 = scmp.ne.s32.totalorder %s792_s20, 0 }
  0x4b   : > { %541 = vsyncadd (%p801_p7), [#allocation5], 4294967200  ;;  %s362_s24 = sshll.u32 %s721_s19, 2  ;;  %s158_s27 = scalar_lea.sflag [#allocation8], %s721_s19 }
  0x4c   : > { %s161_s28 = scalar_lea.vmem [#allocation7], %s362_s24 }
  0x4d   : > { %543 = dma.done.wait (%p802_p4), %s158_s27, 64  }
  0x4e   : > { %545 = vsyncadd (%p802_p4), %s158_s27, 4294967232  ;;  %s730_s22 = smul.u32 10, %s616_s0  ;;  %v182_v0 = vld [vmem:[#allocation4] sm:$0x3]  ;;  %v184_v1 = vld [vmem:[#allocation4 + $0x2] sm:$0x3] }
  0x4f   : > { %v186_v2 = vld [vmem:[#allocation4 + $0x4] sm:$0x3]  ;;  %v230_v3 = vld [vmem:[%s161_s28] sm:$0x3]  ;;  %v364_v5 = vld [vmem:[%s161_s28 + $0x2] sm:$0x3] }
  0x50   : > { %s188_s30 = sld [smem:[#allocation3 + %s730_s22]]  ;;  %s189_s4 = sadd.s32 1, %s730_s22  ;;  %vm243_vm14 = vcmask 1041408  }
  0x51   : > { %s190_s14 = sld [smem:[#allocation3 + %s189_s4]]  ;;  %s191_s23 = sadd.s32 2, %s730_s22 }
  0x52   : > { %s192_s25 = sld [smem:[#allocation3 + %s191_s23]]  ;;  %s195_s29 = sadd.s32 3, %s730_s22 }
  0x53   : > { %s196_s5 = sld [smem:[#allocation3 + %s195_s29]]  ;;  %s200_s20 = sadd.s32 4, %s730_s22 }
  0x54   : > { %s201_s6 = sld [smem:[#allocation3 + %s200_s20]]  ;;  %s205_s10 = sadd.s32 5, %s730_s22 }
  0x55   : > { %s206_s9 = sld [smem:[#allocation3 + %s205_s10]]  ;;  %s210_s11 = sadd.s32 6, %s730_s22 }
  0x56   : > { %v233_v4 = vstv %s188_s30  ;;  %s211_s12 = sld [smem:[#allocation3 + %s210_s11]]  ;;  %s215_s13 = sadd.s32 7, %s730_s22 }
  0x57   : > { %v234_v6 = vsub.f32 %v233_v4, %v182_v0  ;;  %v236_v7 = vstv %s190_s14  ;;  %s216_s24 = sld [smem:[#allocation3 + %s215_s13]]  ;;  %s220_s27 = sadd.s32 8, %s730_s22 }
  0x58   : > { %v193_v8 = vstv %s192_s25  ;;  %v237_v9 = vsub.f32 %v236_v7, %v184_v1  ;;  %s221_s4 = sld [smem:[#allocation3 + %s220_s27]]  ;;  %s225_s23 = sadd.s32 9, %s730_s22 }
  0x59   : > { %vm194_vm0 = vcmp.eq.f32.partialorder %v186_v2, %v193_v8  ;;  %v197_v10 = vstv %s196_s5  ;;  %v235_v11 = vsub.f32 %v230_v3, %v234_v6  ;;  %s226_s29 = sld [smem:[#allocation3 + %s225_s23]]  ;;  %s363_s28 = sshll.u32 %s721_s19, 3 }
  0x5a   : > { %vm198_vm1 = vcmp.eq.f32.partialorder %v186_v2, %v197_v10  ;;  %v202_v12 = vstv %s201_s6  ;;  %v238_v13 = vsub.f32 %v364_v5, %v237_v9  ;;  %s181_s22 = scalar_lea.vmem [#allocation9], %s363_s28  ;;  %s366_s14 = sshll.u32 %s616_s0, 7 }
  0x5b   : > { %vm199_vm2 = vmor %vm194_vm0, %vm198_vm1  ;;  %vm203_vm3 = vcmp.eq.f32.partialorder %v186_v2, %v202_v12  ;;  %v239_v14 = vmul.f32 %v235_v11, %v235_v11  ;;  %v207_v15 = vstv %s206_s9  ;;  %s271_s30 = sshll.u32 %s181_s22, 4  ;;  %s269_s6 = scalar_lea.hbm %s787_s3, %s366_s14  ;;  %s744_s30 = int_to_ptr.vmem [resolvable:$true] %s271_s30 }
  0x5c   : > { %vm204_vm4 = vmor %vm199_vm2, %vm203_vm3  ;;  %v240_v16 = vmul.f32 %v238_v13, %v238_v13  ;;  %vm208_vm5 = vcmp.eq.f32.partialorder %v186_v2, %v207_v15  ;;  %v212_v17 = vstv %s211_s12  ;;  %s258_s10 = scalar_lea.sflag [#allocation6], %s721_s19  ;;  %s494_s9 = scalar_lea.vmem %s744_s30, 128 }
  0x5d   : > { %vm209_vm6 = vmor %vm204_vm4, %vm208_vm5  ;;  %vm213_vm7 = vcmp.eq.f32.partialorder %v186_v2, %v212_v17  ;;  %v217_v18 = vstv %s216_s24  ;;  %p495_p8 = scmp.ne.s32.totalorder %s744_s30, %s494_s9  ;;  %p803_p3 = scmp.ne.s32.totalorder %s797_s8, 0 }
  0x5e   : > { %vm214_vm8 = vmor %vm209_vm6, %vm213_vm7  ;;  %vm218_vm9 = vcmp.eq.f32.partialorder %v186_v2, %v217_v18  ;;  %v222_v19 = vstv %s221_s4  ;;  %v241_v20 = vadd.f32 %v240_v16, %v239_v14  ;;  %s571_s11 = smov [#allocation9]  }
  0x5f   : > { %vm219_vm10 = vmor %vm214_vm8, %vm218_vm9  ;;  %vm223_vm11 = vcmp.eq.f32.partialorder %v186_v2, %v222_v19  ;;  %v227_v21 = vstv %s226_s29  ;;  %p496_p11 = pnand %p495_p8, %p803_p3  ;;  %s498_s0 = sshll.u32 %s571_s11, 4  ;;  %s499_s0 = int_to_ptr.vmem [resolvable:$false] %s498_s0 }
  0x60   : > { %vm224_vm12 = vmor %vm219_vm10, %vm223_vm11  ;;  %vm228_vm13 = vcmp.eq.f32.partialorder %v186_v2, %v227_v21  ;;  %s500_s12 = scalar_lea.vmem %s499_s0, 256  ;;  %p501_p10 = scmp.lt.s32.totalorder %s744_s30, %s499_s0 }
  0x61   : > { %vm229_vm15 = vmor %vm224_vm12, %vm228_vm13  ;;  %p497_p9 = pneg %p496_p11  ;;  %p502_p12 = scmp.lt.s32.totalorder %s500_s12, %s494_s9 }
  0x62   : > { %v242_v22 = vsel %vm229_vm15, %v241_v20, 0.0 }
  0x63   : > { %v244_v23 = vsel %vm243_vm14, %v242_v22, 0.0  ;;  %p503_p13 = por %p502_p12, %p501_p10 }
  0x64   : > { %245 = vadd.xlane.f32.xlu0 %v244_v23 }
  0x65   : > { %p504_p0 = pnand %p503_p13, %p497_p9 }
  0xed   : > { %v246_v24 = vpop.xlane.xlu0 %245 }
  0xee   : > { %v247_v25 = vrot.slane %v246_v24, 4 }
  0xf0   : > { %v248_v26 = vadd.f32 %v247_v25, %v246_v24 }
  0xf2   : > { %v249_v27 = vrot.slane %v248_v26, 2 }
  0xf4   : > { %v250_v28 = vadd.f32 %v249_v27, %v248_v26 }
  0xf6   : > { %v251_v29 = vrot.slane %v250_v28, 1 }
  0xf8   : > { %v252_v30 = vadd.f32 %v251_v29, %v250_v28 }
  0xfa   : > { %370 = vpush %v252_v30 }
 0x12b   : > { %s371_s25 = spop %370 }
 0x12c   : > { %v255_v31 = vstv %s371_s25 }
 0x12d   : > { %256 = vst [vmem:[%s181_s22] sm:$0xff] %v255_v31 }
 0x12e   : > { %507 = shalt.err (!%p504_p0)
}
 0x12f   : > { %s508_s13 = scalar_lea.hbm %s269_s6, 128  ;;  %s512_s27 = scalar_lea.hbm %s787_s3, 256 }
 0x130   : > { %p509_p5 = scmp.ne.s32.totalorder %s269_s6, %s508_s13  ;;  %p513_p6 = scmp.lt.s32.totalorder %s269_s6, %s787_s3 }
 0x131   : > { %p514_p7 = scmp.lt.s32.totalorder %s512_s27, %s508_s13 }
 0x132   : > { %p510_p2 = pnand %p509_p5, %p803_p3 }
 0x133   : > { %p515_p4 = por %p514_p7, %p513_p6 }
 0x134   : > { %p511_p1 = pneg %p510_p2 }
 0x136   : > { %p516_p8 = pnand %p515_p4, %p511_p1 }
 0x138   : > { %519 = shalt.err (!%p516_p8)
}
 0x139   : > { %378 = dma.vmem_to_hbm [thread:$0]  (%p803_p3), %s744_s30, 128, %s269_s6, %s258_s10  }
 0x13a PF: > { %s283_s29 = sand.u32 1, %s552_s15   ;;  %p804_p11 = scmp.ne.s32.totalorder %s793_s21, 0 }
 0x13b   : > { %p805_p9 = scmp.ge.s32.totalorder %s564_s18, 2  ;;  %s284_s28 = scalar_lea.sflag [#allocation6], %s283_s29 }
 0x13d   : > { %p389_p10 = pnand %p805_p9, %p804_p11 }
 0x13f   : > { %p390_p12 = pneg %p389_p10 }
 0x141   : > { %547 = dma.done.wait (%p390_p12), %s284_s28, 128  }
 0x142   : > { %549 = vsyncadd (%p390_p12), %s284_s28, 4294967168  ;;  %p21_p13 = scmp.ge.s32.totalorder %s649_s26, 4   ;;  %s806_s15 = smov %s556_s16 }
 0x143   : > { %s807_s16 = smov %s560_s17  ;;  %s808_s17 = smov %s669_s7 }
 0x144   : > { %s809_s18 = smov %s649_s26  ;;  %23 = sbr.rel (!%p21_p13) target bundleno = 11 (0xb), region = 81 }
 0x149   :  { %289 = vsyncpa [#allocation5], 1 }
 0x14a   :  { %291 = vsyncpa [#allocation5 + $0x1], 1 }
 0x14b   :  { %292 = vsyncpa [#allocation8], 1 }
 0x14c   :  { %294 = vsyncpa [#allocation8 + $0x1], 1 }
 0x14d   :  { %295 = vsyncpa [#allocation6], 1 }
 0x14e   :  { %297 = vsyncpa [#allocation6 + $0x1], 1 }

</bundles_post_ra>
